<compile_context>
chip_gen: v7x
topology: tpu7x:2x2x1
jax: 0.10.0
libtpu: 0.0.40
codegen_flags: <defaults>
</compile_context>

<pallas_src>
import functools

import jax
import jax.numpy as jnp
from jax.experimental import pallas as pl
from jax.experimental.pallas import tpu as pltpu


def _round_up(v, m):
    return (v + m - 1) // m * m


def _pick_tile(total, candidates):
    for c in candidates:
        if total % c == 0:
            return c
    return 128


# ------------- kernel 1: fused feature transform  x @ [W_lin | W_conv] (+bias) -------------
def transform_kernel(x_ref, w_ref, b_ref, hlin_ref, hmsg_ref):
    h = jnp.dot(x_ref[...], w_ref[...], preferred_element_type=jnp.float32)  # [tm, 2*Cp]
    c = hlin_ref.shape[-1]
    hlin_ref[...] = (h[:, :c] + b_ref[...]).astype(hlin_ref.dtype)            # lin + bias
    hmsg_ref[...] = h[:, c:].astype(hmsg_ref.dtype)                           # conv messages


# ------------- kernel 2: out = H_lin + inv_deg * (A_01 @ H_msg), tiled reduction -------------
def aggregate_kernel(hlin_ref, adj_ref, hmsg_ref, invdeg_ref, out_ref, acc_ref,
                     *, tk, hmsg_resident):
    k = pl.program_id(1)

    @pl.when(k == 0)
    def _():
        acc_ref[...] = jnp.zeros_like(acc_ref)

    if hmsg_resident:
        # H_msg is fully VMEM-resident; slice the current k-chunk of source rows.
        off = pl.multiple_of(k * tk, 128)
        hmsg = hmsg_ref[pl.ds(off, tk), :]
    else:
        hmsg = hmsg_ref[...]

    # Adjacency streamed as exact 0/1 bf16; upcast to f32 for the MXU accumulate.
    acc_ref[...] += jnp.dot(adj_ref[...].astype(jnp.float32), hmsg,
                            preferred_element_type=jnp.float32)

    @pl.when(k == pl.num_programs(1) - 1)
    def _():
        out_ref[...] = (hlin_ref[...]
                        + acc_ref[...] * invdeg_ref[...]).astype(out_ref.dtype)


def rgcn_forward(x, edge_index, w_lin, b_lin, w_conv, *, adj_dtype=jnp.bfloat16):
    """x: [N, Cin] f32, edge_index: [2, E] int32 (row0 = src j, row1 = dst i).
    Weights pre-transposed to [Cin, Cout]."""
    N, c_in = x.shape
    c_out = w_lin.shape[1]

    # Lane-dense padding: last dims multiples of 128.
    c_out_pad = _round_up(c_out, 128)
    n_pad = _round_up(N, 128)

    # Tile sizes (multiples of (8, 128)) evenly dividing the padded extents.
    # Prefer >= 2 row blocks so the "parallel" axis can shard across v7x's 2 TCs.
    tm1 = _pick_tile(n_pad, (1024, 512, 256, 128))          # pass-1 row tile
    if n_pad // tm1 < 2 and tm1 > 128:
        tm1 //= 2
    tm = _pick_tile(n_pad, (512, 256, 128))                 # pass-2 dst-row tile
    if n_pad // tm < 2 and tm > 128:
        tm //= 2
    tk = _pick_tile(n_pad, (2048, 1024, 512, 256, 128))     # pass-2 src-col tile

    # --- glue: 0/1 adjacency built directly at padded size & target dtype ---
    src = edge_index[0]
    dst = edge_index[1]
    adj = jnp.zeros((n_pad, n_pad), adj_dtype).at[dst, src].add(
        jnp.ones((), adj_dtype))                            # A[i, j] = #edges j->i (exact)
    deg = jnp.zeros((n_pad,), jnp.float32).at[dst].add(1.0)  # O(E), no O(N^2) reduce
    inv_deg = (1.0 / jnp.maximum(deg, 1.0)).reshape(n_pad, 1)  # mean; isolated rows -> 0*1

    # --- fuse + pad weights into one [Cin, 2*Cout_pad] MXU operand ---
    w_lin_p = jnp.pad(w_lin, ((0, 0), (0, c_out_pad - c_out)))
    w_conv_p = jnp.pad(w_conv, ((0, 0), (0, c_out_pad - c_out)))
    w_cat = jnp.concatenate([w_lin_p, w_conv_p], axis=1)     # [Cin, 2*Cout_pad]
    b_pad = jnp.pad(b_lin, (0, c_out_pad - c_out)).reshape(1, c_out_pad)
    x_pad = jnp.pad(x, ((0, n_pad - N), (0, 0)))

    # ---------------- pass 1: H_lin (+bias) and H_msg, computed once ----------------
    hlin, hmsg = pl.pallas_call(
        transform_kernel,
        out_shape=(jax.ShapeDtypeStruct((n_pad, c_out_pad), jnp.float32),
                   jax.ShapeDtypeStruct((n_pad, c_out_pad), jnp.float32)),
        grid_spec=pltpu.PrefetchScalarGridSpec(
            num_scalar_prefetch=0,
            grid=(n_pad // tm1,),
            in_specs=[
                pl.BlockSpec((tm1, c_in), lambda i: (i, 0)),
                pl.BlockSpec((c_in, 2 * c_out_pad), lambda i: (0, 0)),  # weights resident
                pl.BlockSpec((1, c_out_pad), lambda i: (0, 0)),         # bias resident
            ],
            out_specs=[
                pl.BlockSpec((tm1, c_out_pad), lambda i: (i, 0)),
                pl.BlockSpec((tm1, c_out_pad), lambda i: (i, 0)),
            ],
        ),
        compiler_params=pltpu.CompilerParams(
            dimension_semantics=("parallel",),
            vmem_limit_bytes=32 * 1024 * 1024),
        cost_estimate=pl.CostEstimate(
            flops=2 * n_pad * c_in * 2 * c_out_pad,
            transcendentals=0,
            bytes_accessed=4 * (n_pad * c_in + c_in * 2 * c_out_pad
                                + c_out_pad + 2 * n_pad * c_out_pad),
        ),
    )(x_pad, w_cat, b_pad)

    # ---------------- pass 2: out = H_lin + inv_deg * (A_01 @ H_msg) ----------------
    adj_itemsize = jnp.dtype(adj_dtype).itemsize
    hmsg_bytes = n_pad * c_out_pad * 4
    hmsg_resident = hmsg_bytes <= 4 * 1024 * 1024    # fits comfortably in scoped VMEM

    if hmsg_resident:
        hmsg_spec = pl.BlockSpec((n_pad, c_out_pad), lambda i, k: (0, 0))  # fetched once
    else:
        hmsg_spec = pl.BlockSpec((tk, c_out_pad), lambda i, k: (k, 0))     # streamed tiles

    hmsg_traffic = hmsg_bytes if hmsg_resident else (n_pad // tm) * hmsg_bytes

    agg_kernel = functools.partial(aggregate_kernel, tk=tk, hmsg_resident=hmsg_resident)

    out_pad = pl.pallas_call(
        agg_kernel,
        out_shape=jax.ShapeDtypeStruct((n_pad, c_out_pad), jnp.float32),
        grid_spec=pltpu.PrefetchScalarGridSpec(
            num_scalar_prefetch=0,
            grid=(n_pad // tm, n_pad // tk),
            in_specs=[
                pl.BlockSpec((tm, c_out_pad), lambda i, k: (i, 0)),   # H_lin (dst rows)
                pl.BlockSpec((tm, tk), lambda i, k: (i, k)),          # 0/1 adjacency tile
                hmsg_spec,                                            # H_msg (src rows)
                pl.BlockSpec((tm, 1), lambda i, k: (i, 0)),           # inv_deg (dst rows)
            ],
            out_specs=pl.BlockSpec((tm, c_out_pad), lambda i, k: (i, 0)),
            scratch_shapes=[pltpu.VMEM((tm, c_out_pad), jnp.float32)],
        ),
        compiler_params=pltpu.CompilerParams(
            dimension_semantics=("parallel", "arbitrary"),
            vmem_limit_bytes=32 * 1024 * 1024),   # safe ceiling for v7x's 64 MiB VMEM
        cost_estimate=pl.CostEstimate(
            flops=2 * n_pad * n_pad * c_out_pad + 2 * n_pad * c_out_pad,
            transcendentals=0,
            bytes_accessed=(adj_itemsize * n_pad * n_pad
                            + hmsg_traffic
                            + 4 * 2 * n_pad * c_out_pad      # hlin read + out write
                            + 4 * n_pad),                    # inv_deg
        ),
    )(hlin, adj, hmsg, inv_deg)

    return out_pad[:N, :c_out]


def rgcn_reference(x, edge_index, w_lin, b_lin, w_conv):
    """Pure-JAX reference mirroring PyG semantics."""
    N = x.shape[0]
    src, dst = edge_index[0], edge_index[1]
    h_lin = x @ w_lin + b_lin
    h_msg = x @ w_conv                                   # transformed source features
    msgs = h_msg[src]                                    # [E, Cout]
    summed = jnp.zeros((N, w_conv.shape[1]), jnp.float32).at[dst].add(msgs)
    cnt = jnp.zeros((N,), jnp.float32).at[dst].add(1.0)
    agg = summed / jnp.maximum(cnt, 1.0)[:, None]
    return h_lin + agg


if __name__ == "__main__":
    key = jax.random.PRNGKey(0)
    N, E = 16, 48
    in_channels, out_channels = 32, 32

    k_x, k_e1, k_e2, k_wl, k_bl, k_wc = jax.random.split(key, 6)

    x = jax.random.normal(k_x, (N, in_channels), dtype=jnp.float32)
    src = jax.random.randint(k_e1, (E,), 0, N, dtype=jnp.int32)
    dst = jax.random.randint(k_e2, (E,), 0, N, dtype=jnp.int32)
    edge_index = jnp.stack([src, dst], axis=0)                       # [2, E]

    # Deterministic parameter init (Kaiming-uniform-style bounds, like nn.Linear).
    bound = 1.0 / (in_channels ** 0.5)
    w_lin = jax.random.uniform(k_wl, (in_channels, out_channels),
                               minval=-bound, maxval=bound, dtype=jnp.float32)
    b_lin = jax.random.uniform(k_bl, (out_channels,),
                               minval=-bound, maxval=bound, dtype=jnp.float32)
    w_conv = jax.random.uniform(k_wc, (in_channels, out_channels),
                                minval=-bound, maxval=bound, dtype=jnp.float32)

    out = rgcn_forward(x, edge_index, w_lin, b_lin, w_conv)
    out = jax.block_until_ready(out)

    ref = rgcn_reference(x, edge_index, w_lin, b_lin, w_conv)
    assert out.shape == (N, out_channels)
    assert jnp.allclose(out, ref, atol=1e-4, rtol=1e-4), "mismatch vs reference"

    print("KERNEL_OK")
</pallas_src>

<mosaic_0001>
module attributes {stable_mosaic.version = 11 : i64} {
  func.func @transform_kernel(%arg0: i32, %arg1: memref<128x32xf32, #tpu.memory_space<vmem>>, %arg2: memref<32x256xf32, #tpu.memory_space<vmem>>, %arg3: memref<1x128xf32, #tpu.memory_space<vmem>>, %arg4: memref<128x128xf32, #tpu.memory_space<vmem>>, %arg5: memref<128x128xf32, #tpu.memory_space<vmem>>) attributes {dimension_semantics = [#tpu.dimension_semantics<parallel>], iteration_bounds = array<i64: 1>, scalar_prefetch = 0 : i64, scratch_operands = 0 : i64, tpu.core_type = #tpu.core_type<tc>, window_params = [{transform_indices = @transform_0, window_bounds = array<i64: 128, 32>}, {pipeline_mode = #tpu.pipeline_mode<synchronous>, transform_indices = @transform_1, window_bounds = array<i64: 32, 256>}, {pipeline_mode = #tpu.pipeline_mode<synchronous>, transform_indices = @transform_2, window_bounds = array<i64: 1, 128>}, {transform_indices = @transform_3, window_bounds = array<i64: 128, 128>}, {transform_indices = @transform_4, window_bounds = array<i64: 128, 128>}]} {
    %c0 = arith.constant 0 : index
    %c0_0 = arith.constant 0 : index
    %0 = vector.load %arg1[%c0, %c0_0] : memref<128x32xf32, #tpu.memory_space<vmem>>, vector<128x32xf32>
    %c0_1 = arith.constant 0 : index
    %c0_2 = arith.constant 0 : index
    %1 = vector.load %arg2[%c0_1, %c0_2] : memref<32x256xf32, #tpu.memory_space<vmem>>, vector<32x256xf32>
    %cst = arith.constant dense<0.000000e+00> : vector<128x256xf32>
    %2 = tpu.matmul %0, %1, %cst {dimension_numbers = #tpu.dot_dimension_numbers<[1], [0], [0], [1], [0, 0, 1, 1], [], []>} : vector<128x32xf32>, vector<32x256xf32>, vector<128x256xf32> -> vector<128x256xf32>
    %3 = vector.extract_strided_slice %2 {offsets = [0, 0], sizes = [128, 128], strides = [1, 1]} : vector<128x256xf32> to vector<128x128xf32>
    %c0_3 = arith.constant 0 : index
    %c0_4 = arith.constant 0 : index
    %4 = vector.load %arg3[%c0_3, %c0_4] : memref<1x128xf32, #tpu.memory_space<vmem>>, vector<1x128xf32>
    %5 = vector.broadcast %4 : vector<1x128xf32> to vector<128x128xf32>
    %6 = arith.addf %3, %5 : vector<128x128xf32>
    %c0_5 = arith.constant 0 : index
    %c0_6 = arith.constant 0 : index
    %7 = vector.load %arg4[%c0_5, %c0_6] : memref<128x128xf32, #tpu.memory_space<vmem>>, vector<128x128xf32>
    tpu.vector_store %arg4[%c0_5, %c0_6], %6 {strides = array<i32>} : memref<128x128xf32, #tpu.memory_space<vmem>>, vector<128x128xf32>,
    %8 = vector.extract_strided_slice %2 {offsets = [0, 128], sizes = [128, 128], strides = [1, 1]} : vector<128x256xf32> to vector<128x128xf32>
    %c0_7 = arith.constant 0 : index
    %c0_8 = arith.constant 0 : index
    %9 = vector.load %arg5[%c0_7, %c0_8] : memref<128x128xf32, #tpu.memory_space<vmem>>, vector<128x128xf32>
    tpu.vector_store %arg5[%c0_7, %c0_8], %8 {strides = array<i32>} : memref<128x128xf32, #tpu.memory_space<vmem>>, vector<128x128xf32>,
    return
  }
  func.func @transform_0(%arg0: i32) -> (i32, i32) {
    %c0_i32 = arith.constant 0 : i32
    %c0_i32_0 = arith.constant 0 : i32
    return %arg0, %c0_i32 : i32, i32
  }
  func.func @transform_1(%arg0: i32) -> (i32, i32) {
    %c0_i32 = arith.constant 0 : i32
    %c0_i32_0 = arith.constant 0 : i32
    %c0_i32_1 = arith.constant 0 : i32
    return %c0_i32, %c0_i32_0 : i32, i32
  }
  func.func @transform_2(%arg0: i32) -> (i32, i32) {
    %c0_i32 = arith.constant 0 : i32
    %c0_i32_0 = arith.constant 0 : i32
    %c0_i32_1 = arith.constant 0 : i32
    return %c0_i32, %c0_i32_0 : i32, i32
  }
  func.func @transform_3(%arg0: i32) -> (i32, i32) {
    %c0_i32 = arith.constant 0 : i32
    %c0_i32_0 = arith.constant 0 : i32
    return %arg0, %c0_i32 : i32, i32
  }
  func.func @transform_4(%arg0: i32) -> (i32, i32) {
    %c0_i32 = arith.constant 0 : i32
    %c0_i32_0 = arith.constant 0 : i32
    return %arg0, %c0_i32 : i32, i32
  }
}

</mosaic_0001>

<bundles_post_ra>
// kernel: tpu_custom_call.1
= control target key start
LH: loop header
LB: loop body
LE: loop exit
PB: predicated region body
PF: predicated region fallthrough
CT: control target
= control target key end

     0   :  { %10 = vsyncpa [#allocation3], 0  ;;  %v421_v7 = vmov 0.0   ;;  %vm42_vm0 = vcmask 261120   ;;  %s591_s0 = inlined_call_operand.vmem [shape: f32[128,32], index: 0, kind: input, shape index: {}]   ;;  %s592_s1 = inlined_call_operand.vmem [shape: f32[32,256], index: 1, kind: input, shape index: {}]   ;;  %s593_s2 = inlined_call_operand.vmem [shape: f32[1,128], index: 2, kind: input, shape index: {}]   ;;  %s594_s3 = inlined_call_operand.hbm [shape: f32[128,128], index: 3, kind: output, shape index: {0}]   ;;  %s595_s4 = inlined_call_operand.hbm [shape: f32[128,128], index: 4, kind: output, shape index: {1}]  }
   0x1   :  { %v35_v0 = vld [vmem:[%s592_s1 + $0x8] sm:$0xff]  ;;  %v37_v1 = vld [vmem:[%s592_s1 + $0x18] sm:$0xff]  ;;  %v34_v2 = vld [vmem:[%s592_s1] sm:$0xff]  ;;  %155 = vmatprep.mubr.f32.mxu0 %v421_v7  ;;  %203 = vmatprep.mubr.f32.mxu1 %v421_v7 }
   0x2   :  { %v356_v3 = vpack.c.bf16 %v37_v1, %v35_v0  ;;  %v36_v4 = vld [vmem:[%s592_s1 + $0x10] sm:$0xff]  ;;  %v39_v5 = vld [vmem:[%s592_s1 + $0x28] sm:$0xff]  ;;  %v41_v6 = vld [vmem:[%s592_s1 + $0x38] sm:$0xff] }
   0x3   :  { %v358_v8 = vpack.c.bf16 %v36_v4, %v34_v2  ;;  %v360_v9 = vpack.c.bf16 %v41_v6, %v39_v5  ;;  %v38_v10 = vld [vmem:[%s592_s1 + $0x20] sm:$0xff]  ;;  %v40_v11 = vld [vmem:[%s592_s1 + $0x30] sm:$0xff] }
   0x4   :  { %357 = vmatprep.subr.bf16.mxu0 %v356_v3  ;;  %364 = vmatprep.subr.bf16.mxu1 %v356_v3  ;;  %v362_v12 = vpack.c.bf16 %v40_v11, %v38_v10  ;;  %v18_v13 = vld [vmem:[%s591_s0] sm:$0xff] }
   0x5   :  { %359 = vmatpush1.bf16.msra.mxu0 %v358_v8  ;;  %366 = vmatpush1.bf16.msra.mxu1 %v358_v8  ;;  %v26_v14 = vld [vmem:[%s591_s0 + $0x40] sm:$0xff] }
   0x6   :  { %361 = vmatprep.subr.bf16.mxu0 %v360_v9  ;;  %365 = vmatprep.subr.bf16.mxu1 %v360_v9 }
   0x9   :  { %363 = vmatpush1.bf16.msra.mxu0 %v362_v12  ;;  %367 = vmatpush1.bf16.msra.mxu1 %v362_v12 }
   0xa   :  { %11 = vsyncpa [#allocation5], 0  ;;  %v19_v15 = vld [vmem:[%s591_s0 + $0x8] sm:$0xff]  ;;  %v20_v17 = vld [vmem:[%s591_s0 + $0x10] sm:$0xff]  ;;  %s423_s11 = smov [#allocation2]  }
   0xb   :  { %v27_v16 = vld [vmem:[%s591_s0 + $0x48] sm:$0xff]  ;;  %v28_v18 = vld [vmem:[%s591_s0 + $0x50] sm:$0xff]  ;;  %v21_v19 = vld [vmem:[%s591_s0 + $0x18] sm:$0xff]  ;;  %s312_s12 = sshll.u32 %s423_s11, 4  ;;  %s560_s12 = int_to_ptr.vmem [resolvable:$true] %s312_s12 }
   0xc   :  { %339 = vmatmul.mubr.msk.f32.vlgmr.msra.gmra.mrb[0].mxu0 %vm42_vm0, %v18_v13  ;;  %347 = vmatmul.mubr.msk.f32.vlgmr.msra.gmra.mrb[0].mxu1 %vm42_vm0, %v26_v14  ;;  %v29_v20 = vld [vmem:[%s591_s0 + $0x58] sm:$0xff]  ;;  %v22_v21 = vld [vmem:[%s591_s0 + $0x20] sm:$0xff]  ;;  %v23_v23 = vld [vmem:[%s591_s0 + $0x28] sm:$0xff] }
   0xd   :  { %161 = vmatprep.mubr.f32.mxu0 %v421_v7  ;;  %209 = vmatprep.mubr.f32.mxu1 %v421_v7  ;;  %v30_v22 = vld [vmem:[%s591_s0 + $0x60] sm:$0xff]  ;;  %v31_v24 = vld [vmem:[%s591_s0 + $0x68] sm:$0xff]  ;;  %v24_v25 = vld [vmem:[%s591_s0 + $0x30] sm:$0xff] }
   0xe   :  { %v32_v26 = vld [vmem:[%s591_s0 + $0x70] sm:$0xff]  ;;  %v25_v27 = vld [vmem:[%s591_s0 + $0x38] sm:$0xff]  ;;  %v542_v29 = vld [vmem:[%s593_s2] ss:$0 sm:$0xff] }
   0xf   :  { %v33_v28 = vld [vmem:[%s591_s0 + $0x78] sm:$0xff]  ;;  %s422_s0 = smov [#allocation4]  }
  0x10   :  { %340 = vmatmul.mubr.msk.f32.gmra.mrb[2].mxu0 %vm42_vm0, %v19_v15  ;;  %348 = vmatmul.mubr.msk.f32.gmra.mrb[2].mxu1 %vm42_vm0, %v27_v16  ;;  %s324_s2 = sshll.u32 %s422_s0, 4  ;;  %s325_s2 = int_to_ptr.vmem [resolvable:$true] %s324_s2 }
  0x11   :  { %167 = vmatprep.mubr.f32.mxu0 %v421_v7  ;;  %215 = vmatprep.mubr.f32.mxu1 %v421_v7  ;;  %s373_s13 = scalar_lea.vmem %s325_s2, 2048  ;;  %p378_p1 = scmp.lt.s32.totalorder %s325_s2, %s325_s2 }
  0x12   :  { %p374_p0 = scmp.ne.s32.totalorder %s325_s2, %s373_s13  ;;  %p379_p2 = scmp.lt.s32.totalorder %s373_s13, %s373_s13 }
  0x14   :  { %341 = vmatmul.mubr.msk.f32.gmra.mrb[4].mxu0 %vm42_vm0, %v20_v17  ;;  %349 = vmatmul.mubr.msk.f32.gmra.mrb[4].mxu1 %vm42_vm0, %v28_v18  ;;  %p380_p3 = por %p379_p2, %p378_p1 }
  0x15   :  { %173 = vmatprep.mubr.f32.mxu0 %v421_v7  ;;  %221 = vmatprep.mubr.f32.mxu1 %v421_v7 }
  0x16   :  { %p381_p4 = pnand %p380_p3, %p374_p0 }
  0x18   :  { %342 = vmatmul.mubr.msk.f32.gmra.mrb[6].mxu0 %vm42_vm0, %v21_v19  ;;  %350 = vmatmul.mubr.msk.f32.gmra.mrb[6].mxu1 %vm42_vm0, %v29_v20 }
  0x19   :  { %179 = vmatprep.mubr.f32.mxu0 %v421_v7  ;;  %227 = vmatprep.mubr.f32.mxu1 %v421_v7 }
  0x1c   :  { %343 = vmatmul.mubr.msk.f32.gmra.mrb[8].mxu0 %vm42_vm0, %v22_v21  ;;  %351 = vmatmul.mubr.msk.f32.gmra.mrb[8].mxu1 %vm42_vm0, %v30_v22 }
  0x1d   :  { %185 = vmatprep.mubr.f32.mxu0 %v421_v7  ;;  %233 = vmatprep.mubr.f32.mxu1 %v421_v7 }
  0x20   :  { %344 = vmatmul.mubr.msk.f32.gmra.mrb[10].mxu0 %vm42_vm0, %v23_v23  ;;  %352 = vmatmul.mubr.msk.f32.gmra.mrb[10].mxu1 %vm42_vm0, %v31_v24 }
  0x21   :  { %191 = vmatprep.mubr.f32.mxu0 %v421_v7  ;;  %239 = vmatprep.mubr.f32.mxu1 %v421_v7 }
  0x24   :  { %345 = vmatmul.mubr.msk.f32.gmra.mrb[12].mxu0 %vm42_vm0, %v24_v25  ;;  %353 = vmatmul.mubr.msk.f32.gmra.mrb[12].mxu1 %vm42_vm0, %v32_v26 }
  0x25   :  { %197 = vmatprep.mubr.f32.mxu0 %v421_v7  ;;  %245 = vmatprep.mubr.f32.mxu1 %v421_v7 }
  0x28   :  { %346 = vmatmul.mubr.msk.f32.gmra.mrb[14].mxu0 %vm42_vm0, %v25_v27  ;;  %354 = vmatmul.mubr.msk.f32.gmra.mrb[14].mxu1 %vm42_vm0, %v33_v28 }
  0xdf   :  { %v157_v30 = vpop.f32.mrb[0].mxu0  ;;  %v205_v31 = vpop.f32.mrb[0].mxu1 }
  0xe0   :  { %v259_v32 = vadd.f32 %v542_v29, %v157_v30  ;;  %v267_v33 = vadd.f32 %v542_v29, %v205_v31  ;;  %v159_v34 = vpop.f32.mrb[1].mxu0  ;;  %v207_v35 = vpop.f32.mrb[1].mxu1 }
  0xe1   :  { %291 = vst [vmem:[#allocation4] sm:$0xff] %v159_v34  ;;  %299 = vst [vmem:[#allocation4 + $0x40] sm:$0xff] %v207_v35 }
  0xe2   :  { %275 = vst [vmem:[#allocation2] sm:$0xff] %v259_v32  ;;  %283 = vst [vmem:[#allocation2 + $0x40] sm:$0xff] %v267_v33 }
  0xe3   :  { %v163_v36 = vpop.f32.mrb[2].mxu0  ;;  %v211_v37 = vpop.f32.mrb[2].mxu1 }
  0xe4   :  { %v260_v38 = vadd.f32 %v542_v29, %v163_v36  ;;  %v268_v39 = vadd.f32 %v542_v29, %v211_v37  ;;  %v165_v40 = vpop.f32.mrb[3].mxu0  ;;  %v213_v41 = vpop.f32.mrb[3].mxu1 }
  0xe5   :  { %292 = vst [vmem:[#allocation4 + $0x8] sm:$0xff] %v165_v40  ;;  %300 = vst [vmem:[#allocation4 + $0x48] sm:$0xff] %v213_v41 }
  0xe6   :  { %276 = vst [vmem:[#allocation2 + $0x8] sm:$0xff] %v260_v38  ;;  %284 = vst [vmem:[#allocation2 + $0x48] sm:$0xff] %v268_v39 }
  0xe7   :  { %v169_v42 = vpop.f32.mrb[4].mxu0  ;;  %v217_v43 = vpop.f32.mrb[4].mxu1 }
  0xe8   :  { %v261_v44 = vadd.f32 %v542_v29, %v169_v42  ;;  %v269_v45 = vadd.f32 %v542_v29, %v217_v43  ;;  %v171_v46 = vpop.f32.mrb[5].mxu0  ;;  %v219_v47 = vpop.f32.mrb[5].mxu1 }
  0xe9   :  { %293 = vst [vmem:[#allocation4 + $0x10] sm:$0xff] %v171_v46  ;;  %301 = vst [vmem:[#allocation4 + $0x50] sm:$0xff] %v219_v47 }
  0xea   :  { %277 = vst [vmem:[#allocation2 + $0x10] sm:$0xff] %v261_v44  ;;  %285 = vst [vmem:[#allocation2 + $0x50] sm:$0xff] %v269_v45 }
  0xeb   :  { %v175_v48 = vpop.f32.mrb[6].mxu0  ;;  %v223_v49 = vpop.f32.mrb[6].mxu1 }
  0xec   :  { %v262_v50 = vadd.f32 %v542_v29, %v175_v48  ;;  %v270_v51 = vadd.f32 %v542_v29, %v223_v49  ;;  %v177_v52 = vpop.f32.mrb[7].mxu0  ;;  %v225_v53 = vpop.f32.mrb[7].mxu1 }
  0xed   :  { %294 = vst [vmem:[#allocation4 + $0x18] sm:$0xff] %v177_v52  ;;  %302 = vst [vmem:[#allocation4 + $0x58] sm:$0xff] %v225_v53 }
  0xee   :  { %278 = vst [vmem:[#allocation2 + $0x18] sm:$0xff] %v262_v50  ;;  %286 = vst [vmem:[#allocation2 + $0x58] sm:$0xff] %v270_v51 }
  0xef   :  { %v181_v54 = vpop.f32.mrb[8].mxu0  ;;  %v229_v55 = vpop.f32.mrb[8].mxu1 }
  0xf0   :  { %v263_v56 = vadd.f32 %v542_v29, %v181_v54  ;;  %v271_v57 = vadd.f32 %v542_v29, %v229_v55  ;;  %v183_v58 = vpop.f32.mrb[9].mxu0  ;;  %v231_v59 = vpop.f32.mrb[9].mxu1 }
  0xf1   :  { %295 = vst [vmem:[#allocation4 + $0x20] sm:$0xff] %v183_v58  ;;  %303 = vst [vmem:[#allocation4 + $0x60] sm:$0xff] %v231_v59 }
  0xf2   :  { %279 = vst [vmem:[#allocation2 + $0x20] sm:$0xff] %v263_v56  ;;  %287 = vst [vmem:[#allocation2 + $0x60] sm:$0xff] %v271_v57 }
  0xf3   :  { %v187_v60 = vpop.f32.mrb[10].mxu0  ;;  %v235_v61 = vpop.f32.mrb[10].mxu1 }
  0xf4   :  { %v264_v62 = vadd.f32 %v542_v29, %v187_v60  ;;  %v272_v63 = vadd.f32 %v542_v29, %v235_v61  ;;  %v189_v0 = vpop.f32.mrb[11].mxu0  ;;  %v237_v1 = vpop.f32.mrb[11].mxu1 }
  0xf5   :  { %296 = vst [vmem:[#allocation4 + $0x28] sm:$0xff] %v189_v0  ;;  %304 = vst [vmem:[#allocation4 + $0x68] sm:$0xff] %v237_v1 }
  0xf6   :  { %280 = vst [vmem:[#allocation2 + $0x28] sm:$0xff] %v264_v62  ;;  %288 = vst [vmem:[#allocation2 + $0x68] sm:$0xff] %v272_v63 }
  0xf7   :  { %v193_v2 = vpop.f32.mrb[12].mxu0  ;;  %v241_v3 = vpop.f32.mrb[12].mxu1 }
  0xf8   :  { %v265_v4 = vadd.f32 %v542_v29, %v193_v2  ;;  %v273_v5 = vadd.f32 %v542_v29, %v241_v3  ;;  %v195_v6 = vpop.f32.mrb[13].mxu0  ;;  %v243_v7 = vpop.f32.mrb[13].mxu1 }
  0xf9   :  { %297 = vst [vmem:[#allocation4 + $0x30] sm:$0xff] %v195_v6  ;;  %305 = vst [vmem:[#allocation4 + $0x70] sm:$0xff] %v243_v7 }
  0xfa   :  { %281 = vst [vmem:[#allocation2 + $0x30] sm:$0xff] %v265_v4  ;;  %289 = vst [vmem:[#allocation2 + $0x70] sm:$0xff] %v273_v5 }
  0xfb   :  { %v199_v8 = vpop.f32.mrb[14].mxu0  ;;  %v247_v9 = vpop.f32.mrb[14].mxu1 }
  0xfc   :  { %v266_v10 = vadd.f32 %v542_v29, %v199_v8  ;;  %v274_v11 = vadd.f32 %v542_v29, %v247_v9  ;;  %v201_v12 = vpop.f32.mrb[15].mxu0  ;;  %v249_v13 = vpop.f32.mrb[15].mxu1 }
  0xfd   :  { %298 = vst [vmem:[#allocation4 + $0x38] sm:$0xff] %v201_v12  ;;  %306 = vst [vmem:[#allocation4 + $0x78] sm:$0xff] %v249_v13 }
  0xfe   :  { %282 = vst [vmem:[#allocation2 + $0x38] sm:$0xff] %v266_v10  ;;  %290 = vst [vmem:[#allocation2 + $0x78] sm:$0xff] %v274_v11 }
  0xff   :  { %384 = shalt.err (!%p381_p4)
}
 0x100   :  { %s385_s16 = scalar_lea.hbm %s595_s4, 2048 }
 0x101   :  { %p386_p5 = scmp.ne.s32.totalorder %s595_s4, %s385_s16  ;;  %p389_p6 = scmp.lt.u32.totalorder %s385_s16, %s595_s4 }
 0x103   :  { %p391_p7 = pnand %p389_p6, %p386_p5 }
 0x105   :  { %394 = shalt.err (!%p391_p7)
}
 0x106   :  { %s424_s21 = smov 128   ;;  %s425_s22 = smov 8  }
 0x107   :  { %330 = dma.vmem_to_hbm [thread:$0]  %s325_s2, 2048, %s595_s4, [#allocation5], %s424_s21, %s424_s21, %s425_s22  }
 0x108   :  { %s395_s25 = scalar_lea.vmem %s560_s12, 2048  ;;  %p400_p9 = scmp.lt.s32.totalorder %s560_s12, %s560_s12 }
 0x109   :  { %p396_p8 = scmp.ne.s32.totalorder %s560_s12, %s395_s25  ;;  %p401_p10 = scmp.lt.s32.totalorder %s395_s25, %s395_s25 }
 0x10b   :  { %p402_p11 = por %p401_p10, %p400_p9 }
 0x10d   :  { %p403_p12 = pnand %p402_p11, %p396_p8 }
 0x10f   :  { %406 = shalt.err (!%p403_p12)
}
 0x110   :  { %s407_s28 = scalar_lea.hbm %s594_s3, 2048 }
 0x111   :  { %p408_p13 = scmp.ne.s32.totalorder %s594_s3, %s407_s28  ;;  %p411_p0 = scmp.lt.u32.totalorder %s407_s28, %s594_s3 }
 0x113   :  { %p413_p1 = pnand %p411_p0, %p408_p13 }
 0x115   :  { %416 = shalt.err (!%p413_p1)
}
 0x116   :  { %318 = dma.vmem_to_hbm [thread:$0]  %s560_s12, 2048, %s594_s3, [#allocation3], %s424_s21, %s424_s21, %s425_s22  }
 0x117   :  { %417 = dma.done.wait [#allocation3], 2048  }
 0x118   :  { %418 = vsyncadd [#allocation3], 4294965248 }
 0x119   :  { %419 = dma.done.wait [#allocation5], 2048  }
 0x11a   :  { %420 = vsyncadd [#allocation5], 4294965248 }
 0x11b   :  { %337 = vsyncpa [#allocation3], 1 }
 0x11c   :  { %338 = vsyncpa [#allocation5], 1 }

</bundles_post_ra>
